<compile_context>
chip_gen: v7x
topology: tpu7x:2x2x1
jax: 0.10.0
libtpu: 0.0.40
codegen_flags: <defaults>
</compile_context>

<pallas_src>
import math
from functools import partial

import jax
import jax.numpy as jnp
from jax import lax
from jax.experimental import pallas as pl
from jax.experimental.pallas import tpu as pltpu


# ------------------------------ helpers -------------------------------------

LANE = 128   # lane (last-dim) alignment
SUB = 16     # sublane alignment (safe for bf16 packing)


def _round_up(x, m):
    return (x + m - 1) // m * m


def _pad2(x, rows, cols):
    return jnp.pad(x, ((0, rows - x.shape[0]), (0, cols - x.shape[1])))


def _tile(dim, cap, align):
    """Largest multiple of `align` that divides `dim` and is <= cap (or dim if small)."""
    if dim <= cap:
        return dim
    t = (cap // align) * align
    while dim % t:
        t -= align
    return t


def _cparams(n_parallel, n_arbitrary):
    return pltpu.CompilerParams(
        dimension_semantics=("parallel",) * n_parallel + ("arbitrary",) * n_arbitrary,
        vmem_limit_bytes=48 * 1024 * 1024,   # sized for v7x's 64 MiB VMEM with headroom
    )


# --------------------------- Pallas kernels ---------------------------------

def _linear_kernel(x_ref, w_ref, b_ref, o_ref, acc_ref, *, act):
    # tiled matmul with f32 K-accumulation; bias + activation fused in epilogue
    k = pl.program_id(2)

    @pl.when(k == 0)
    def _():
        acc_ref[...] = jnp.zeros_like(acc_ref)

    acc_ref[...] += jnp.dot(x_ref[...], w_ref[...],
                            preferred_element_type=jnp.float32)

    @pl.when(k == pl.num_programs(2) - 1)
    def _():
        y = acc_ref[...] + b_ref[...]
        if act == "gelu":
            # TODO(synk): PyTorch nn.GELU defaults to the exact erf form; the tanh
            # approximation is used here for guaranteed Mosaic lowering.
            y = jax.nn.gelu(y)
        elif act == "relu":
            y = jnp.maximum(y, 0.0)
        o_ref[...] = y.astype(o_ref.dtype)


def linear(x, w, b, act=None, out_dtype=jnp.bfloat16):
    """x (M,K) @ w (K,N) + b (1,N), tiled & pipelined. Dims already (SUB,LANE)-aligned."""
    M, K = x.shape
    N = w.shape[1]
    tm = _tile(M, 256, SUB)
    tk = _tile(K, 512, LANE)
    tn = _tile(N, 512, LANE)
    grid = (M // tm, N // tn, K // tk)
    return pl.pallas_call(
        partial(_linear_kernel, act=act),
        out_shape=jax.ShapeDtypeStruct((M, N), out_dtype),
        grid=grid,
        in_specs=[
            pl.BlockSpec((tm, tk), lambda i, j, k: (i, k)),
            pl.BlockSpec((tk, tn), lambda i, j, k: (k, j)),
            pl.BlockSpec((1, tn), lambda i, j, k: (0, j)),
        ],
        out_specs=pl.BlockSpec((tm, tn), lambda i, j, k: (i, j)),
        scratch_shapes=[pltpu.VMEM((tm, tn), jnp.float32)],
        compiler_params=_cparams(2, 1),
    )(x, w, b)


def _linear_res_ln_kernel(x_ref, w_ref, b_ref, res_ref, g_ref, be_ref, o_ref,
                          acc_ref, *, inv_d, eps):
    # matmul with bias + residual add + LayerNorm fused into the last-K epilogue
    k = pl.program_id(1)

    @pl.when(k == 0)
    def _():
        acc_ref[...] = jnp.zeros_like(acc_ref)

    acc_ref[...] += jnp.dot(x_ref[...], w_ref[...],
                            preferred_element_type=jnp.float32)

    @pl.when(k == pl.num_programs(1) - 1)
    def _():
        y = acc_ref[...] + b_ref[...] + res_ref[...].astype(jnp.float32)
        # padded feature columns are exactly zero, so plain sums give exact
        # statistics over the real `d` features (biased variance, matches torch LN)
        s1 = jnp.sum(y, axis=-1, keepdims=True)
        s2 = jnp.sum(y * y, axis=-1, keepdims=True)
        mu = s1 * inv_d
        var = jnp.maximum(s2 * inv_d - mu * mu, 0.0)
        yn = (y - mu) * lax.rsqrt(var + eps)
        o_ref[...] = (yn * g_ref[...] + be_ref[...]).astype(o_ref.dtype)


def linear_residual_layernorm(x, w, b, res, gamma, beta, d_actual, eps,
                              out_dtype=jnp.bfloat16):
    """o = LayerNorm(res + x @ w + b). Full feature row kept in one tile for LN stats."""
    M, K = x.shape
    N = w.shape[1]
    tm = _tile(M, 256, SUB)
    tk = _tile(K, 512, LANE)
    grid = (M // tm, K // tk)
    return pl.pallas_call(
        partial(_linear_res_ln_kernel, inv_d=1.0 / d_actual, eps=eps),
        out_shape=jax.ShapeDtypeStruct((M, N), out_dtype),
        grid=grid,
        in_specs=[
            pl.BlockSpec((tm, tk), lambda i, k: (i, k)),
            pl.BlockSpec((tk, N), lambda i, k: (k, 0)),
            pl.BlockSpec((1, N), lambda i, k: (0, 0)),
            pl.BlockSpec((tm, N), lambda i, k: (i, 0)),
            pl.BlockSpec((1, N), lambda i, k: (0, 0)),
            pl.BlockSpec((1, N), lambda i, k: (0, 0)),
        ],
        out_specs=pl.BlockSpec((tm, N), lambda i, k: (i, 0)),
        scratch_shapes=[pltpu.VMEM((tm, N), jnp.float32)],
        compiler_params=_cparams(1, 1),
    )(x, w, b, res, gamma, beta)


def _flash_attn_kernel(q_ref, k_ref, v_ref, msk_ref, o_ref,
                       m_sc, l_sc, acc_sc, *, scale):
    # flash-style attention: online softmax over KV tiles, scratch in VMEM
    ki = pl.program_id(3)

    @pl.when(ki == 0)
    def _():
        m_sc[...] = jnp.full_like(m_sc, -jnp.inf)
        l_sc[...] = jnp.zeros_like(l_sc)
        acc_sc[...] = jnp.zeros_like(acc_sc)

    q = q_ref[0]             # (tq, Dhp)
    kb = k_ref[0]            # (tk, Dhp)
    vb = v_ref[0]            # (tk, Dhp)
    msk = msk_ref[0]         # (tq, tk)

    # QK^T via dot_general contracting the last dims (no in-kernel transpose)
    s = lax.dot_general(q, kb, (((1,), (1,)), ((), ())),
                        preferred_element_type=jnp.float32) * scale
    s = jnp.where(msk > 0, s, -1e9)      # masked_fill(mask == 0, -1e9)

    m_prev = m_sc[...]
    m_new = jnp.maximum(m_prev, jnp.max(s, axis=-1, keepdims=True))
    alpha = jnp.exp(m_prev - m_new)
    p = jnp.exp(s - m_new)
    l_sc[...] = alpha * l_sc[...] + jnp.sum(p, axis=-1, keepdims=True)
    acc_sc[...] = alpha * acc_sc[...] + jnp.dot(p.astype(vb.dtype), vb,
                                                preferred_element_type=jnp.float32)
    m_sc[...] = m_new

    @pl.when(ki == pl.num_programs(3) - 1)
    def _():
        inv_l = pl.reciprocal(l_sc[...], approx=True)
        o_ref[0] = (acc_sc[...] * inv_l).astype(o_ref.dtype)


def masked_flash_attention(qkv, mask, heads, dh_actual, Dhp, out_dtype=jnp.bfloat16):
    """qkv: (B, Sp, 3*heads*Dhp) bf16, columns packed as [q_h0..q_hH-1|k_h0..|v_h0..],
    each head lane-dense (Dhp-wide). mask: (B, Sp, Sp), 1 = attend.
    Heads are selected purely through BlockSpec index_maps (no activation reshuffle);
    output is written directly in (B, Sp, heads*Dhp) layout."""
    B, Sp, _ = qkv.shape
    tq = Sp if Sp <= 128 else 128
    tk = Sp if Sp <= 128 else 128
    scale = 1.0 / math.sqrt(dh_actual)
    grid = (B, heads, Sp // tq, Sp // tk)
    return pl.pallas_call(
        partial(_flash_attn_kernel, scale=scale),
        out_shape=jax.ShapeDtypeStruct((B, Sp, heads * Dhp), out_dtype),
        grid=grid,
        in_specs=[
            pl.BlockSpec((1, tq, Dhp), lambda b, h, qi, ki: (b, qi, h)),
            pl.BlockSpec((1, tk, Dhp), lambda b, h, qi, ki: (b, ki, heads + h)),
            pl.BlockSpec((1, tk, Dhp), lambda b, h, qi, ki: (b, ki, 2 * heads + h)),
            # per-batch mask indexed by BlockSpec (shared across heads, not broadcast)
            pl.BlockSpec((1, tq, tk), lambda b, h, qi, ki: (b, qi, ki)),
        ],
        out_specs=pl.BlockSpec((1, tq, Dhp), lambda b, h, qi, ki: (b, qi, h)),
        scratch_shapes=[
            pltpu.VMEM((tq, 1), jnp.float32),    # running max
            pltpu.VMEM((tq, 1), jnp.float32),    # running sum
            pltpu.VMEM((tq, Dhp), jnp.float32),  # output accumulator
        ],
        compiler_params=_cparams(3, 1),
    )(qkv, qkv, qkv, mask)


# ------------------------------ parameters ----------------------------------

def init_gpt_params(key, token_size, n, d, heads, d_ff, max_len=64):
    keys = jax.random.split(key, 2 + n)

    def w(k, shape):
        return (jax.random.normal(k, shape, jnp.float32) * 0.02).astype(jnp.float32)

    emb = w(keys[0], (token_size, d))

    # sinusoidal positional encoding
    pos = jnp.arange(max_len, dtype=jnp.float32)[:, None]
    div = jnp.exp(jnp.arange(0, d, 2, dtype=jnp.float32) * (-math.log(10000.0) / d))
    pe = jnp.zeros((max_len, d), jnp.float32)
    pe = pe.at[:, 0::2].set(jnp.sin(pos * div))
    pe = pe.at[:, 1::2].set(jnp.cos(pos * div))

    layers = []
    for i in range(n):
        lk = jax.random.split(keys[2 + i], 6)
        layers.append(dict(
            wq=w(lk[0], (d, d)), bq=jnp.zeros((d,), jnp.float32),
            wk=w(lk[1], (d, d)), bk=jnp.zeros((d,), jnp.float32),
            wv=w(lk[2], (d, d)), bv=jnp.zeros((d,), jnp.float32),
            wo=w(lk[3], (d, d)), bo=jnp.zeros((d,), jnp.float32),
            w1=w(lk[4], (d, d_ff)), b1=jnp.zeros((d_ff,), jnp.float32),
            w2=w(lk[5], (d_ff, d)), b2=jnp.zeros((d,), jnp.float32),
            g1=jnp.ones((d,), jnp.float32), be1=jnp.zeros((d,), jnp.float32),
            g2=jnp.ones((d,), jnp.float32), be2=jnp.zeros((d,), jnp.float32),
        ))

    w_out = w(keys[1], (d, token_size))
    b_out = jnp.zeros((token_size,), jnp.float32)
    return dict(emb=emb, pos=pe, layers=layers, w_out=w_out, b_out=b_out)


def pack_params(params, d, heads, d_ff, token_size):
    """Pad weights to (SUB, LANE)-aligned shapes, cast matmul weights to bf16.
    The QKV weight is fused AND packed per-head (each head padded to a lane-dense
    Dhp=128 column slot) so attention reads heads straight from the projection output;
    wo is packed to consume the attention output layout directly. For dh >= 128 this
    packing costs no extra MXU work; for small dh it trades zero-padded MXU columns
    for removing all per-layer activation transposes/pads."""
    dh = d // heads
    Dp = _round_up(d, LANE)
    Dhp = _round_up(dh, LANE)
    Fp = _round_up(d_ff, LANE)
    Vp = _round_up(token_size, LANE)

    def pw(w, rows, cols):   # weight -> padded bf16 (MXU inputs)
        return _pad2(w, rows, cols).astype(jnp.bfloat16)

    def pv(v, cols):         # vector -> padded (1, cols) f32 (epilogue math stays f32)
        return jnp.pad(v, (0, cols - v.shape[0])).reshape(1, cols).astype(jnp.float32)

    def pack_qkv(L):
        wcols, bcols = [], []
        for wn, bn in (("wq", "bq"), ("wk", "bk"), ("wv", "bv")):
            W = L[wn].reshape(d, heads, dh)
            W = jnp.pad(W, ((0, Dp - d), (0, 0), (0, Dhp - dh)))
            wcols.append(W.reshape(Dp, heads * Dhp))
            bh = jnp.pad(L[bn].reshape(heads, dh), ((0, 0), (0, Dhp - dh)))
            bcols.append(bh.reshape(heads * Dhp))
        return (jnp.concatenate(wcols, axis=1).astype(jnp.bfloat16),
                jnp.concatenate(bcols).reshape(1, 3 * heads * Dhp).astype(jnp.float32))

    def pack_wo(W):
        Wh = W.reshape(heads, dh, d)
        Wh = jnp.pad(Wh, ((0, 0), (0, Dhp - dh), (0, Dp - d)))
        return Wh.reshape(heads * Dhp, Dp).astype(jnp.bfloat16)

    packed_layers = []
    for L in params["layers"]:
        wqkv, bqkv = pack_qkv(L)
        packed_layers.append(dict(
            wqkv=wqkv, bqkv=bqkv,
            wo=pack_wo(L["wo"]), bo=pv(L["bo"], Dp),
            w1=pw(L["w1"], Dp, Fp), b1=pv(L["b1"], Fp),
            w2=pw(L["w2"], Fp, Dp), b2=pv(L["b2"], Dp),
            g1=pv(L["g1"], Dp), be1=pv(L["be1"], Dp),
            g2=pv(L["g2"], Dp), be2=pv(L["be2"], Dp),
        ))
    return dict(
        emb=params["emb"], pos=params["pos"], layers=packed_layers,
        w_out=pw(params["w_out"], Dp, Vp), b_out=pv(params["b_out"], Vp),
        dims=dict(d=d, heads=heads, dh=dh, d_ff=d_ff, vocab=token_size,
                  Dp=Dp, Dhp=Dhp, Fp=Fp, Vp=Vp),
    )


# ------------------------------ forward pass --------------------------------

def gpt_forward(packed, tokens, mask, *, eps, activation="gelu"):
    """tokens: (B, S) int32; mask: (B, 1, S, S) with 1 = attend -> (B, S, vocab) f32."""
    dims = packed["dims"]
    d, heads, dh, vocab = dims["d"], dims["heads"], dims["dh"], dims["vocab"]
    Dp, Dhp = dims["Dp"], dims["Dhp"]

    B, S = tokens.shape
    Sp = _round_up(S, SUB) if S <= 128 else _round_up(S, LANE)
    Mp = B * Sp

    # glue: embedding lookup + positional encoding (XLA gather); pad once and keep the
    # residual stream in the (Mp, Dp) padded layout for the whole stack.
    # dropout omitted (eval-mode identity)
    x = packed["emb"][tokens] + packed["pos"][:S][None, :, :]             # (B, S, d) f32
    x2 = jnp.pad(x, ((0, 0), (0, Sp - S), (0, Dp - d))
                 ).reshape(Mp, Dp).astype(jnp.bfloat16)                   # (Mp, Dp)

    # per-batch mask shared across heads; padded key positions are masked out (0)
    msk = jnp.pad(mask.reshape(B, S, S),
                  ((0, 0), (0, Sp - S), (0, Sp - S))).astype(jnp.float32)

    for L in packed["layers"]:
        # fused QKV projection: one MXU pass, already in per-head lane-dense layout
        qkv = linear(x2, L["wqkv"], L["bqkv"])                            # (Mp, 3*H*Dhp)

        # flash attention reads heads via BlockSpec; output lands in (B, Sp, H*Dhp)
        attn = masked_flash_attention(qkv.reshape(B, Sp, -1), msk, heads, dh, Dhp)

        # output projection (consumes attention layout directly) with fused
        # residual-add + LayerNorm epilogue (post-LN)
        x2 = linear_residual_layernorm(attn.reshape(Mp, heads * Dhp),
                                       L["wo"], L["bo"], x2, L["g1"], L["be1"], d, eps)

        # position-wise FFN; second matmul fuses residual + LayerNorm
        h = linear(x2, L["w1"], L["b1"], act=activation)
        x2 = linear_residual_layernorm(h, L["w2"], L["b2"], x2,
                                       L["g2"], L["be2"], d, eps)

    # LM head: lane-dense vocab tiles, f32 logits
    logits = linear(x2, packed["w_out"], packed["b_out"], out_dtype=jnp.float32)
    return logits.reshape(B, Sp, -1)[:, :S, :vocab]


# ---------------------------------- main -------------------------------------

if __name__ == "__main__":
    # GPTModel(token_size, n, embedding_dim, heads, d_ff, dropout_rate, eps, activation)
    token_size, n, embedding_dim, heads, d_ff = 50, 2, 32, 4, 64
    dropout_rate, eps, activation = 0.1, 1e-5, "gelu"
    B, S = 2, 8

    key = jax.random.PRNGKey(0)
    pkey, tkey = jax.random.split(key)

    params = init_gpt_params(pkey, token_size, n, embedding_dim, heads, d_ff)
    packed = pack_params(params, embedding_dim, heads, d_ff, token_size)

    tokens = jax.random.randint(tkey, (B, S), 0, token_size, dtype=jnp.int32)
    causal = jnp.tril(jnp.ones((S, S), jnp.float32))
    mask = jnp.broadcast_to(causal[None, None], (B, 1, S, S))

    out = gpt_forward(packed, tokens, mask, eps=eps, activation=activation)
    out = jax.block_until_ready(out)
    assert out.shape == (B, S, token_size)
    assert bool(jnp.all(jnp.isfinite(out)))
    print("KERNEL_OK")
</pallas_src>

<mosaic_0001>
module attributes {stable_mosaic.version = 11 : i64} {
  func.func @_linear_kernel(%arg0: i32, %arg1: i32, %arg2: i32, %arg3: memref<32x128xbf16, #tpu.memory_space<vmem>>, %arg4: memref<128x512xbf16, #tpu.memory_space<vmem>>, %arg5: memref<1x512xf32, #tpu.memory_space<vmem>>, %arg6: memref<32x512xbf16, #tpu.memory_space<vmem>>, %arg7: memref<32x512xf32, #tpu.memory_space<vmem>>) attributes {dimension_semantics = [#tpu.dimension_semantics<parallel>, #tpu.dimension_semantics<parallel>, #tpu.dimension_semantics<arbitrary>], iteration_bounds = array<i64: 1, 3, 1>, scalar_prefetch = 0 : i64, scratch_operands = 1 : i64, tpu.core_type = #tpu.core_type<tc>, window_params = [{transform_indices = @transform_0, window_bounds = array<i64: 32, 128>}, {transform_indices = @transform_1, window_bounds = array<i64: 128, 512>}, {transform_indices = @transform_2, window_bounds = array<i64: 1, 512>}, {transform_indices = @transform_3, window_bounds = array<i64: 32, 512>}]} {
    %c0_i32 = arith.constant 0 : i32
    %0 = arith.cmpi eq, %arg2, %c0_i32 : i32
    %1 = arith.extui %0 : i1 to i32
    %c0_i32_0 = arith.constant 0 : i32
    %2 = arith.cmpi ne, %1, %c0_i32_0 : i32
    scf.if %2 {
      %cst_10 = arith.constant 0.000000e+00 : f32
      %12 = vector.broadcast %cst_10 : f32 to vector<32x512xf32>
      %c0_11 = arith.constant 0 : index
      %c0_12 = arith.constant 0 : index
      %13 = vector.load %arg7[%c0_11, %c0_12] : memref<32x512xf32, #tpu.memory_space<vmem>>, vector<32x512xf32>
      tpu.vector_store %arg7[%c0_11, %c0_12], %12 {strides = array<i32>} : memref<32x512xf32, #tpu.memory_space<vmem>>, vector<32x512xf32>,
    } else {
    }
    %c0 = arith.constant 0 : index
    %c0_1 = arith.constant 0 : index
    %3 = vector.load %arg7[%c0, %c0_1] : memref<32x512xf32, #tpu.memory_space<vmem>>, vector<32x512xf32>
    %c0_2 = arith.constant 0 : index
    %c0_3 = arith.constant 0 : index
    %4 = vector.load %arg3[%c0_2, %c0_3] : memref<32x128xbf16, #tpu.memory_space<vmem>>, vector<32x128xbf16>
    %c0_4 = arith.constant 0 : index
    %c0_5 = arith.constant 0 : index
    %5 = vector.load %arg4[%c0_4, %c0_5] : memref<128x512xbf16, #tpu.memory_space<vmem>>, vector<128x512xbf16>
    %cst = arith.constant dense<0.000000e+00> : vector<32x512xf32>
    %6 = tpu.matmul %4, %5, %cst {dimension_numbers = #tpu.dot_dimension_numbers<[1], [0], [0], [1], [0, 0, 1, 1], [], []>} : vector<32x128xbf16>, vector<128x512xbf16>, vector<32x512xf32> -> vector<32x512xf32>
    %7 = arith.addf %3, %6 : vector<32x512xf32>
    %c0_6 = arith.constant 0 : index
    %c0_7 = arith.constant 0 : index
    %8 = vector.load %arg7[%c0_6, %c0_7] : memref<32x512xf32, #tpu.memory_space<vmem>>, vector<32x512xf32>
    tpu.vector_store %arg7[%c0_6, %c0_7], %7 {strides = array<i32>} : memref<32x512xf32, #tpu.memory_space<vmem>>, vector<32x512xf32>,
    %c0_i32_8 = arith.constant 0 : i32
    %9 = arith.cmpi eq, %arg2, %c0_i32_8 : i32
    %10 = arith.extui %9 : i1 to i32
    %c0_i32_9 = arith.constant 0 : i32
    %11 = arith.cmpi ne, %10, %c0_i32_9 : i32
    scf.if %11 {
      %c0_10 = arith.constant 0 : index
      %c0_11 = arith.constant 0 : index
      %12 = vector.load %arg7[%c0_10, %c0_11] : memref<32x512xf32, #tpu.memory_space<vmem>>, vector<32x512xf32>
      %c0_12 = arith.constant 0 : index
      %c0_13 = arith.constant 0 : index
      %13 = vector.load %arg5[%c0_12, %c0_13] : memref<1x512xf32, #tpu.memory_space<vmem>>, vector<1x512xf32>
      %14 = vector.broadcast %13 : vector<1x512xf32> to vector<32x512xf32>
      %15 = arith.addf %12, %14 : vector<32x512xf32>
      %16 = arith.truncf %15 : vector<32x512xf32> to vector<32x512xbf16>
      %c0_14 = arith.constant 0 : index
      %c0_15 = arith.constant 0 : index
      %17 = vector.load %arg6[%c0_14, %c0_15] : memref<32x512xbf16, #tpu.memory_space<vmem>>, vector<32x512xbf16>
      tpu.vector_store %arg6[%c0_14, %c0_15], %16 {strides = array<i32>} : memref<32x512xbf16, #tpu.memory_space<vmem>>, vector<32x512xbf16>,
    } else {
    }
    return
  }
  func.func @transform_0(%arg0: i32, %arg1: i32, %arg2: i32) -> (i32, i32) {
    %c0_i32 = arith.constant 0 : i32
    return %arg0, %arg2 : i32, i32
  }
  func.func @transform_1(%arg0: i32, %arg1: i32, %arg2: i32) -> (i32, i32) {
    %c0_i32 = arith.constant 0 : i32
    return %arg2, %arg1 : i32, i32
  }
  func.func @transform_2(%arg0: i32, %arg1: i32, %arg2: i32) -> (i32, i32) {
    %c0_i32 = arith.constant 0 : i32
    %c0_i32_0 = arith.constant 0 : i32
    return %c0_i32, %arg1 : i32, i32
  }
  func.func @transform_3(%arg0: i32, %arg1: i32, %arg2: i32) -> (i32, i32) {
    %c0_i32 = arith.constant 0 : i32
    return %arg0, %arg1 : i32, i32
  }
}

</mosaic_0001>

<bundles_post_ra>
// kernel: tpu_custom_call.1
= control target key start
LH: loop header
LB: loop body
LE: loop exit
PB: predicated region body
PF: predicated region fallthrough
CT: control target
= control target key end

     0   :  { %s1647_s0 = inlined_call_operand.hbm [shape: bf16[32,128], index: 0, kind: input, shape index: {}]   ;;  %s1648_s1 = inlined_call_operand.hbm [shape: bf16[128,1536], index: 1, kind: input, shape index: {}]   ;;  %s1649_s2 = inlined_call_operand.hbm [shape: f32[1,1536], index: 2, kind: input, shape index: {}]   ;;  %s1650_s3 = inlined_call_operand.hbm [shape: bf16[32,1536], index: 3, kind: output, shape index: {}]  }
   0x1   :  { %1659 = sst [smem:[#allocation14_spill]] %s1648_s1 }
   0x2   :  { %8 = vsyncpa [#allocation4], 0 }
   0x3   :  { %9 = vsyncpa [#allocation7], 0 }
   0x4   :  { %11 = vsyncpa [#allocation7 + $0x1], 0 }
   0x5   :  { %12 = vsyncpa [#allocation5], 0 }
   0x6   :  { %14 = vsyncpa [#allocation5 + $0x1], 0  ;;  %s1341_s12 = smov 0   ;;  %s1343_s13 = smov 0  }
   0x7   :  { %s1345_s14 = smov 0   ;;  %s1347_s15 = smov 0  }
   0x8   :  { %s1349_s16 = smov 0   ;;  %s1351_s17 = smov 0  }
   0x9 LB: > { %s35_s18 = sadd.s32 1, %s1302_s16  ;;  %s76_s19 = sadd.s32 1, %s1294_s14  ;;  %s1306_s17 = sphi %s1351_s17, %s20_s17   ;;  %s1302_s16 = sphi %s1349_s16, %s1682_s16   ;;  %s1298_s15 = sphi %s1347_s15, %s1681_s15   ;;  %s1294_s14 = sphi %s1345_s14, %s1680_s14   ;;  %s1290_s13 = sphi %s1343_s13, %s1679_s13   ;;  %s1286_s12 = sphi %s1341_s12, %s1678_s12  }
   0xa   : > { %p37_p0 = scmp.ge.s32.totalorder %s35_s18, 3  ;;  %p83_p1 = scmp.ne.s32.totalorder %s1294_s14, %s1290_s13 }
   0xb   : > { %p84_p2 = scmp.eq.s32.totalorder %s1306_s17, 0  ;;  %p1021_p4 = scmp.lt.s32.totalorder %s1306_s17, 3 }
   0xc   : > { %s1684_s18 = smov (%p37_p0, %s35_s18), 0  ;;  %s184_s21 = sand.u32 1, %s1306_s17  }
   0xd   : > { %1660 = sst [smem:[#allocation13_spill]] %s1684_s18  ;;  %p85_p3 = por %p84_p2, %p83_p1 }
   0xe   : > { %s72_s20 = ssub.s32 %s1302_s16, %s1684_s18  ;;  %s186_s22 = sand.u32 1, %s1294_s14  }
   0xf   : > { %p74_p5 = scmp.eq.s32.totalorder %s72_s20, 0  ;;  %s984_s23 = sshll.u32 %s1302_s16, 8 }
  0x10   : > { %s926_s25 = sshll.u32 %s186_s22, 8  ;;  %s1661_s1 = sld [smem:[#allocation14_spill]] }
  0x11   : > { %s1388_s24 = scalar_select %p74_p5, %s1294_s14, %s76_s19  }
  0x12   : > { %p1397_p6 = pnand %p1021_p4, %p85_p3  ;;  %s188_s30 = scalar_lea.vmem [#allocation6], %s926_s25 }
  0x13   : > { %s198_s4 = sshll.u32 %s188_s30, 4  ;;  %s1403_s5 = scalar_lea.sflag [#allocation7], %s184_s21  ;;  %s1401_s4 = int_to_ptr.vmem [resolvable:$true] %s198_s4 }
  0x14   : > { %s1662_s29 = scalar_select %p1397_p6, 1, 0 }
  0x15   : > { %p1653_p8 = pneg %p1397_p6 }
  0x16   : > { %s1395_s28 = scalar_lea.hbm %s1661_s1, %s984_s23  ;;  %s1137_s9 = scalar_lea.hbm %s1661_s1, 12288 }
  0x17   : > { %s1132_s6 = scalar_lea.hbm %s1395_s28, 4096  ;;  %p1138_p11 = scmp.lt.u32.totalorder %s1395_s28, %s1661_s1 }
  0x18   : > { %p1133_p7 = scmp.ne.s32.totalorder %s1395_s28, %s1132_s6  ;;  %p1139_p12 = scmp.lt.u32.totalorder %s1137_s9, %s1132_s6 }
  0x19   : > { %p1141_p0 = scmp.lt.u32.totalorder %s1132_s6, %s1395_s28 }
  0x1a   : > { %p1135_p9 = pnand %p1653_p8, %p1133_p7  ;;  %p1140_p13 = por %p1139_p12, %p1138_p11 }
  0x1c   : > { %p1136_p10 = pneg %p1135_p9  ;;  %p1142_p2 = por %p1141_p0, %p1140_p13 }
  0x1e   : > { %p1143_p3 = pnand %p1142_p2, %p1136_p10 }
  0x20   : > { %1146 = shalt.err (!%p1143_p3)
}
  0x21   : > { %s1147_s19 = scalar_lea.vmem %s1401_s4, 4096  ;;  %s1308_s20 = smov [#allocation6]  }
  0x22   : > { %p1148_p4 = scmp.ne.s32.totalorder %s1401_s4, %s1147_s19  ;;  %s1152_s21 = sshll.u32 %s1308_s20, 4  ;;  %s1153_s21 = int_to_ptr.vmem [resolvable:$false] %s1152_s21 }
  0x23   : > { %s1154_s23 = scalar_lea.vmem %s1153_s21, 8192  ;;  %p1155_p9 = scmp.lt.s32.totalorder %s1401_s4, %s1153_s21 }
  0x24   : > { %p1150_p5 = pnand %p1148_p4, %p1653_p8  ;;  %p1156_p11 = scmp.lt.s32.totalorder %s1154_s23, %s1147_s19 }
  0x26   : > { %p1151_p7 = pneg %p1150_p5  ;;  %p1157_p12 = por %p1156_p11, %p1155_p9 }
  0x28   : > { %p1158_p13 = pnand %p1157_p12, %p1151_p7 }
  0x2a   : > { %1161 = shalt.err (!%p1158_p13)
}
  0x2b   : > { %s1309_s25 = smov 768   ;;  %s1310_s26 = smov 256  }
  0x2c   : > { %s1311_s27 = smov 16   ;;  %s1432_s30 = sadd.s32 4294967295, %s1306_s17  }
  0x2d   : > { %1012 = dma.hbm_to_vmem [thread:$0]  (!%p1397_p6), %s1395_s28, 4096, %s1401_s4, %s1403_s5, %s1309_s25, %s1310_s26, %s1311_s27  }
  0x2e   : > { %s922_s6 = sadd.s32 4294967294, %s1306_s17   ;;  %p89_p10 = scmp.ne.s32.totalorder %s1290_s13, %s1286_s12 }
  0x2f   : > { %p1652_p0 = scmp.eq.s32.totalorder %s1432_s30, 0  ;;  %p141_p2 = scmp.eq.s32.totalorder %s1432_s30, 2 }
  0x30   : > { %p147_p3 = scmp.eq.s32.totalorder %s922_s6, 2  ;;  %p923_p5 = scmp.ge.s32.totalorder %s1306_s17, 1 }
  0x31   : > { %p1441_p4 = por %p1652_p0, %p89_p10  ;;  %p1449_p7 = por %p141_p2, %p83_p1 }
  0x32   : > { %p1453_p9 = por %p147_p3, %p89_p10  ;;  %p154_p11 = scmp.lt.s32.totalorder %s1306_s17, 4 }
  0x33   : > { %s1663_s7 = scalar_select %p1441_p4, 1, 0 }
  0x34   : > { %s1664_s28 = scalar_select %p1449_p7, 1, 0 }
  0x35   : > { %s1665_s4 = scalar_select %p1453_p9, 1, 0 }
  0x36   : > { %p1458_p12 = pnand %p923_p5, %p154_p11  ;;  %s1312_s9 = smov [#allocation3]  }
  0x37   : > { %s170_s10 = sshll.u32 %s1312_s9, 4  ;;  %s929_s11 = sshll.u32 %s186_s22, 2  ;;  %s1462_s10 = int_to_ptr.vmem [resolvable:$true] %s170_s10 }
  0x38   : > { %s1666_s8 = scalar_select %p1458_p12, 1, 0 }
  0x39   : > { %p1005_p13 = pneg %p1458_p12  ;;  %s985_s19 = sshll.u32 %s1302_s16, 6 }
  0x3a   : > { %s1478_s25 = scalar_lea.hbm %s1649_s2, %s985_s19  ;;  %s212_s26 = scalar_lea.vmem [#allocation8], %s929_s11 }
  0x3b   : > { %p1471_p1 = pnand %p1005_p13, %p1652_p0  ;;  %s220_s27 = sshll.u32 %s212_s26, 4  ;;  %s1480_s27 = int_to_ptr.vmem [resolvable:$true] %s220_s27 }
  0x3c   : > { %s1162_s22 = scalar_lea.hbm %s1647_s0, 256 }
  0x3d   : > { %p1163_p10 = scmp.ne.s32.totalorder %s1647_s0, %s1162_s22  ;;  %p1164_p2 = pneg %p1471_p1 }
  0x3e   : > { %p1169_p11 = scmp.lt.u32.totalorder %s1162_s22, %s1647_s0 }
  0x3f   : > { %p1165_p3 = pnand %p1164_p2, %p1163_p10 }
  0x41   : > { %p1166_p5 = pneg %p1165_p3 }
  0x43   : > { %p1171_p13 = pnand %p1169_p11, %p1166_p5 }
  0x45   : > { %1174 = shalt.err (!%p1171_p13)
}
  0x46   : > { %s1175_s11 = scalar_lea.vmem %s1462_s10, 256  ;;  %p1183_p7 = scmp.lt.s32.totalorder %s1462_s10, %s1462_s10 }
  0x47   : > { %p1176_p0 = scmp.ne.s32.totalorder %s1462_s10, %s1175_s11  ;;  %p1184_p4 = scmp.lt.s32.totalorder %s1175_s11, %s1175_s11 }
  0x49   : > { %p1178_p8 = pnand %p1176_p0, %p1164_p2  ;;  %p1185_p12 = por %p1184_p4, %p1183_p7 }
  0x4b   : > { %p1179_p9 = pneg %p1178_p8 }
  0x4d   : > { %p1186_p6 = pnand %p1185_p12, %p1179_p9 }
  0x4f   : > { %1189 = shalt.err (!%p1186_p6)
}
  0x50   : > { %s1313_s1 = smov 64   ;;  %s1314_s18 = smov 4  }
  0x51   : > { %1008 = dma.hbm_to_vmem [thread:$0]  (!%p1471_p1), %s1647_s0, 256, %s1462_s10, [#allocation4], %s1313_s1, %s1313_s1, %s1314_s18  }
  0x52   : > { %s1190_s6 = scalar_lea.hbm %s1478_s25, 64  ;;  %p1668_p0 = scmp.ne.s32.totalorder %s1662_s29, 0 }
  0x53   : > { %p1191_p8 = scmp.ne.s32.totalorder %s1478_s25, %s1190_s6  ;;  %s1195_s21 = scalar_lea.hbm %s1649_s2, 192 }
  0x54   : > { %p1669_p4 = pneg %p1668_p0  ;;  %p1196_p9 = scmp.lt.u32.totalorder %s1478_s25, %s1649_s2 }
  0x55   : > { %p1197_p12 = scmp.lt.u32.totalorder %s1195_s21, %s1190_s6  ;;  %p1199_p2 = scmp.lt.u32.totalorder %s1190_s6, %s1478_s25 }
  0x56   : > { %p1193_p7 = pnand %p1191_p8, %p1669_p4 }
  0x57   : > { %p1198_p10 = por %p1197_p12, %p1196_p9 }
  0x58   : > { %p1194_p6 = pneg %p1193_p7 }
  0x59   : > { %p1200_p3 = por %p1199_p2, %p1198_p10 }
  0x5b   : > { %p1201_p5 = pnand %p1200_p3, %p1194_p6 }
  0x5d   : > { %1204 = shalt.err (!%p1201_p5)
}
  0x5e   : > { %s1205_s10 = scalar_lea.vmem %s1480_s27, 64  ;;  %p1670_p11 = pmov %p1669_p4 }
  0x5f   : > { %p1206_p1 = scmp.ne.s32.totalorder %s1480_s27, %s1205_s10  ;;  %s1315_s20 = smov [#allocation8]  }
  0x60   : > { %s1210_s1 = sshll.u32 %s1315_s20, 4  ;;  %s1211_s1 = int_to_ptr.vmem [resolvable:$false] %s1210_s1 }
  0x61   : > { %p1208_p13 = pnand %p1206_p1, %p1670_p11  ;;  %s1212_s18 = scalar_lea.vmem %s1211_s1, 128 }
  0x62   : > { %p1213_p4 = scmp.lt.s32.totalorder %s1480_s27, %s1211_s1  ;;  %p1214_p7 = scmp.lt.s32.totalorder %s1212_s18, %s1205_s10 }
  0x63   : > { %p1209_p8 = pneg %p1208_p13 }
  0x64   : > { %p1215_p9 = por %p1214_p7, %p1213_p4 }
  0x66   : > { %p1216_p12 = pnand %p1215_p9, %p1209_p8 }
  0x68   : > { %1219 = shalt.err (!%p1216_p12)
}
  0x69   : > { %1015 = dma.hbm_to_vmem [thread:$0]  (!%p1668_p0), %s1478_s25, 64, %s1480_s27, %s1403_s5  }
  0x6a   : > { %p1671_p6 = scmp.ne.s32.totalorder %s1666_s8, 0 }
  0x6b   : > { %p1672_p10 = scmp.eq.s32.totalorder (!%p1671_p6), %s1432_s30, 0 }
  0x6c   : > { %229 = sbr.rel (%p1671_p6) target bundleno = 398 (0x18e), region = 32 }
  0x73   : > { %1273 = dma.done.wait (%p1672_p10), [#allocation4], 256   ;;  %p1673_p2 = pmov %p1672_p10 }
  0x74   : > { %s235_s19 = sand.u32 1, %s1432_s30   ;;  %s1535_s26 = sand.u32 1, %s1290_s13  }
  0x75   : > { %1275 = vsyncadd (%p1673_p2), [#allocation4], 4294967040  ;;  %s934_s29 = sshll.u32 %s1535_s26, 8  ;;  %s236_s6 = scalar_lea.sflag [#allocation7], %s235_s19 }
  0x76   : > { %s1538_s9 = scalar_lea.vmem [#allocation6], %s934_s29  ;;  %p1674_p0 = scmp.ne.s32.totalorder %s1663_s7, 0 }
  0x78   : > { %1277 = dma.done.wait (%p1674_p0), %s236_s6, 4160  }
  0x79   : > { %1279 = vsyncadd (%p1674_p0), %s236_s6, 4294963136  ;;  %v1316_v0 = vmov 0   ;;  %v1082_v1 = vld [vmem:[%s1538_s9 + $0x4] ss:$16 sps:$4 sm:$0xff]   ;;  %v1084_v2 = vld [vmem:[%s1538_s9 + $0xc] ss:$16 sps:$4 sm:$0xff]   ;;  %v686_v35 = vlaneseq }
  0x7a   : > { %559 = vmatprep.mubr.bf16.mxu0 %v1316_v0  ;;  %612 = vmatprep.mubr.bf16.mxu1 %v1316_v0  ;;  %v1086_v3 = vld [vmem:[%s1538_s9] ss:$16 sps:$4 sm:$0xff]   ;;  %v1087_v4 = vld [vmem:[%s1538_s9 + $0x8] ss:$16 sps:$4 sm:$0xff]   ;;  %v1088_v5 = vld [vmem:[%s1538_s9 + $0x24] ss:$16 sps:$4 sm:$0xff]  }
  0x7b   : > { %527 = vmatprep.subr.bf16.mxu0 %v1082_v1  ;;  %580 = vmatprep.subr.bf16.mxu1 %v1084_v2  ;;  %v1090_v6 = vld [vmem:[%s1538_s9 + $0x2c] ss:$16 sps:$4 sm:$0xff]   ;;  %v1092_v7 = vld [vmem:[%s1538_s9 + $0x20] ss:$16 sps:$4 sm:$0xff]   ;;  %v1093_v8 = vld [vmem:[%s1538_s9 + $0x28] ss:$16 sps:$4 sm:$0xff]  }
  0x7c   : > { %528 = vmatpush1.bf16.msra.mxu0 %v1086_v3  ;;  %581 = vmatpush1.bf16.msra.mxu1 %v1087_v4  ;;  %v1094_v9 = vld [vmem:[%s1538_s9 + $0x44] ss:$16 sps:$4 sm:$0xff]   ;;  %v1096_v10 = vld [vmem:[%s1538_s9 + $0x4c] ss:$16 sps:$4 sm:$0xff]   ;;  %v1098_v11 = vld [vmem:[%s1538_s9 + $0x40] ss:$16 sps:$4 sm:$0xff]  }
  0x7d   : > { %529 = vmatprep.subr.bf16.mxu0 %v1088_v5  ;;  %582 = vmatprep.subr.bf16.mxu1 %v1090_v6  ;;  %v1099_v12 = vld [vmem:[%s1538_s9 + $0x48] ss:$16 sps:$4 sm:$0xff]   ;;  %v1100_v13 = vld [vmem:[%s1538_s9 + $0x64] ss:$16 sps:$4 sm:$0xff]   ;;  %v1102_v14 = vld [vmem:[%s1538_s9 + $0x6c] ss:$16 sps:$4 sm:$0xff]  }
  0x7e   : > { %v1104_v15 = vld [vmem:[%s1538_s9 + $0x60] ss:$16 sps:$4 sm:$0xff]   ;;  %v1105_v16 = vld [vmem:[%s1538_s9 + $0x68] ss:$16 sps:$4 sm:$0xff]   ;;  %v1106_v17 = vld [vmem:[%s1538_s9 + $0x84] ss:$16 sps:$4 sm:$0xff]  }
  0x7f   : > { %v1108_v18 = vld [vmem:[%s1538_s9 + $0x8c] ss:$16 sps:$4 sm:$0xff]   ;;  %v1110_v19 = vld [vmem:[%s1538_s9 + $0x80] ss:$16 sps:$4 sm:$0xff]   ;;  %v1111_v20 = vld [vmem:[%s1538_s9 + $0x88] ss:$16 sps:$4 sm:$0xff]  }
  0x80   : > { %530 = vmatpush1.bf16.msra.mxu0 %v1092_v7  ;;  %583 = vmatpush1.bf16.msra.mxu1 %v1093_v8  ;;  %v1112_v21 = vld [vmem:[%s1538_s9 + $0xa4] ss:$16 sps:$4 sm:$0xff]   ;;  %v1114_v22 = vld [vmem:[%s1538_s9 + $0xac] ss:$16 sps:$4 sm:$0xff]   ;;  %v1116_v23 = vld [vmem:[%s1538_s9 + $0xa0] ss:$16 sps:$4 sm:$0xff]  }
  0x81   : > { %531 = vmatprep.subr.bf16.mxu0 %v1094_v9  ;;  %584 = vmatprep.subr.bf16.mxu1 %v1096_v10  ;;  %v1117_v24 = vld [vmem:[%s1538_s9 + $0xa8] ss:$16 sps:$4 sm:$0xff]   ;;  %v1118_v25 = vld [vmem:[%s1538_s9 + $0xc4] ss:$16 sps:$4 sm:$0xff]   ;;  %v1120_v26 = vld [vmem:[%s1538_s9 + $0xcc] ss:$16 sps:$4 sm:$0xff]  }
  0x82   : > { %v1122_v27 = vld [vmem:[%s1538_s9 + $0xc0] ss:$16 sps:$4 sm:$0xff]   ;;  %v1123_v28 = vld [vmem:[%s1538_s9 + $0xc8] ss:$16 sps:$4 sm:$0xff]   ;;  %v1124_v29 = vld [vmem:[%s1538_s9 + $0xe4] ss:$16 sps:$4 sm:$0xff]  }
  0x83   : > { %v1126_v30 = vld [vmem:[%s1538_s9 + $0xec] ss:$16 sps:$4 sm:$0xff]   ;;  %v1128_v31 = vld [vmem:[%s1538_s9 + $0xe0] ss:$16 sps:$4 sm:$0xff]   ;;  %v1129_v32 = vld [vmem:[%s1538_s9 + $0xe8] ss:$16 sps:$4 sm:$0xff]  }
  0x84   : > { %532 = vmatpush1.bf16.msra.mxu0 %v1098_v11  ;;  %585 = vmatpush1.bf16.msra.mxu1 %v1099_v12  ;;  %v1130_v33 = vld [vmem:[#allocation3] sm:$0xff]   ;;  %v1131_v34 = vld [vmem:[#allocation3 + $0x8] sm:$0xff]   ;;  %s935_s5 = sshll.u32 %s1535_s26, 2  ;;  %v687_v36 = vshrl.u32 %v686_v35, 7  ;;  %s936_s7 = sshll.u32 %s1535_s26, 6 }
  0x85   : > { %533 = vmatprep.subr.bf16.mxu0 %v1100_v13  ;;  %586 = vmatprep.subr.bf16.mxu1 %v1102_v14  ;;  %s248_s30 = scalar_lea.vmem [#allocation8], %s935_s5  ;;  %s1582_s8 = scalar_lea.vmem [#allocation9], %s936_s7 }
  0x86   : > { %v688_v37 = vsub.s32 0, %v687_v36  ;;  %v696_v38 = vsub.s32 2, %v687_v36  ;;  %v684_v39 = vld [vmem:[%s248_s30] sm:$0xf]  ;;  %v692_v40 = vsub.s32 1, %v687_v36  ;;  %v700_v41 = vsub.s32 3, %v687_v36 }
  0x87   : > { %s795_s25 = sshll.u32 %s1582_s8, 4  ;;  %s994_s27 = sshll.u32 %s1298_s15, 8  ;;  %s1590_s25 = int_to_ptr.vmem [resolvable:$true] %s795_s25 }
  0x88   : > { %534 = vmatpush1.bf16.msra.mxu0 %v1104_v15  ;;  %587 = vmatpush1.bf16.msra.mxu1 %v1105_v16  ;;  %v689_v42 = vrot.slane %v684_v39, %v688_v37  ;;  %v697_v43 = vrot.slane %v684_v39, %v696_v38  ;;  %v693_v44 = vrot.slane %v684_v39, %v692_v40  ;;  %s1595_s23 = scalar_lea.hbm %s1650_s3, %s994_s27  ;;  %s779_s15 = scalar_lea.sflag [#allocation5], %s1535_s26 }
  0x89   : > { %535 = vmatprep.subr.bf16.mxu0 %v1106_v17  ;;  %588 = vmatprep.subr.bf16.mxu1 %v1108_v18  ;;  %v701_v45 = vrot.slane %v684_v39, %v700_v41  ;;  %s1220_s11 = scalar_lea.vmem %s1590_s25, 1024  ;;  %p1675_p5 = scmp.ne.s32.totalorder %s1664_s28, 0 }
  0x8a   : > { %p1221_p3 = scmp.ne.s32.totalorder %s1590_s25, %s1220_s11  ;;  %s1317_s10 = smov [#allocation9]  }
  0x8b   : > { %s1224_s20 = sshll.u32 %s1317_s10, 4  ;;  %s1225_s20 = int_to_ptr.vmem [resolvable:$false] %s1224_s20 }
  0x8c   : > { %536 = vmatpush1.bf16.msra.mxu0 %v1110_v19  ;;  %589 = vmatpush1.bf16.msra.mxu1 %v1111_v20  ;;  %p1222_p1 = pnand %p1221_p3, %p1675_p5  ;;  %s1226_s1 = scalar_lea.vmem %s1225_s20, 2048 }
  0x8d   : > { %537 = vmatprep.subr.bf16.mxu0 %v1112_v21  ;;  %590 = vmatprep.subr.bf16.mxu1 %v1114_v22  ;;  %p1227_p13 = scmp.lt.s32.totalorder %s1590_s25, %s1225_s20  ;;  %p1228_p8 = scmp.lt.s32.totalorder %s1226_s1, %s1220_s11 }
  0x8e   : > { %p1223_p11 = pneg %p1222_p1 }
  0x8f   : > { %p1229_p4 = por %p1228_p8, %p1227_p13 }
  0x90   : > { %538 = vmatpush1.bf16.msra.mxu0 %v1116_v23  ;;  %591 = vmatpush1.bf16.msra.mxu1 %v1117_v24 }
  0x91   : > { %539 = vmatprep.subr.bf16.mxu0 %v1118_v25  ;;  %592 = vmatprep.subr.bf16.mxu1 %v1120_v26  ;;  %p1230_p7 = pnand %p1229_p4, %p1223_p11 }
  0x94   : > { %540 = vmatpush1.bf16.msra.mxu0 %v1122_v27  ;;  %593 = vmatpush1.bf16.msra.mxu1 %v1123_v28 }
  0x95   : > { %541 = vmatprep.subr.bf16.mxu0 %v1124_v29  ;;  %594 = vmatprep.subr.bf16.mxu1 %v1126_v30 }
  0x98   : > { %542 = vmatpush1.bf16.msra.mxu0 %v1128_v31  ;;  %595 = vmatpush1.bf16.msra.mxu1 %v1129_v32 }
  0x9b   : > { %560 = vmatmul.mubr.bf16.vlgmr.msra.gmra.mrb[0].mxu0 %v1130_v33  ;;  %613 = vmatmul.mubr.bf16.vlgmr.msra.gmra.mrb[0].mxu1 %v1130_v33 }
  0x9c   : > { %569 = vmatprep.mubr.bf16.mxu0 %v1316_v0  ;;  %622 = vmatprep.mubr.bf16.mxu1 %v1316_v0 }
  0xa3   : > { %570 = vmatmul.mubr.bf16.gmra.mrb[4].mxu0 %v1131_v34  ;;  %623 = vmatmul.mubr.bf16.gmra.mrb[4].mxu1 %v1131_v34 }
 0x16e   : > { %v561_v46 = vpop.f32.mrb[0].mxu0  ;;  %v614_v47 = vpop.f32.mrb[0].mxu1 }
 0x16f   : > { %v706_v48 = vadd.f32 %v689_v42, %v561_v46  ;;  %v708_v49 = vadd.f32 %v697_v43, %v614_v47  ;;  %v563_v50 = vpop.f32.mrb[1].mxu0  ;;  %v616_v51 = vpop.f32.mrb[1].mxu1 }
 0x170   : > { %v707_v52 = vadd.f32 %v693_v44, %v563_v50  ;;  %v709_v53 = vadd.f32 %v701_v45, %v616_v51  ;;  %v565_v54 = vpop.f32.mrb[2].mxu0  ;;  %v618_v55 = vpop.f32.mrb[2].mxu1 }
 0x171   : > { %v710_v56 = vadd.f32 %v689_v42, %v565_v54  ;;  %v712_v57 = vadd.f32 %v697_v43, %v618_v55  ;;  %v567_v58 = vpop.f32.mrb[3].mxu0  ;;  %v620_v59 = vpop.f32.mrb[3].mxu1 }
 0x172   : > { %v986_v60 = vpack.c.bf16 %v707_v52, %v706_v48  ;;  %v987_v61 = vpack.c.bf16 %v709_v53, %v708_v49  ;;  %v711_v62 = vadd.f32 %v693_v44, %v567_v58  ;;  %v713_v63 = vadd.f32 %v701_v45, %v620_v59 }
 0x174   : > { %770 = vst [vmem:[%s1582_s8] sm:$0xff] %v986_v60  ;;  %771 = vst [vmem:[%s1582_s8 + $0x8] sm:$0xff] %v987_v61  ;;  %v988_v0 = vpack.c.bf16 %v711_v62, %v710_v56  ;;  %v989_v1 = vpack.c.bf16 %v713_v63, %v712_v57 }
 0x176   : > { %772 = vst [vmem:[%s1582_s8 + $0x10] sm:$0xff] %v988_v0  ;;  %773 = vst [vmem:[%s1582_s8 + $0x18] sm:$0xff] %v989_v1  ;;  %v571_v2 = vpop.f32.mrb[4].mxu0  ;;  %v624_v3 = vpop.f32.mrb[4].mxu1 }
 0x177   : > { %v714_v4 = vadd.f32 %v689_v42, %v571_v2  ;;  %v716_v5 = vadd.f32 %v697_v43, %v624_v3  ;;  %v573_v6 = vpop.f32.mrb[5].mxu0  ;;  %v626_v7 = vpop.f32.mrb[5].mxu1 }
 0x178   : > { %v715_v8 = vadd.f32 %v693_v44, %v573_v6  ;;  %v717_v9 = vadd.f32 %v701_v45, %v626_v7  ;;  %v575_v10 = vpop.f32.mrb[6].mxu0  ;;  %v628_v11 = vpop.f32.mrb[6].mxu1 }
 0x179   : > { %v718_v12 = vadd.f32 %v689_v42, %v575_v10  ;;  %v720_v13 = vadd.f32 %v697_v43, %v628_v11  ;;  %v577_v14 = vpop.f32.mrb[7].mxu0  ;;  %v630_v15 = vpop.f32.mrb[7].mxu1 }
 0x17a   : > { %v990_v16 = vpack.c.bf16 %v715_v8, %v714_v4  ;;  %v991_v17 = vpack.c.bf16 %v717_v9, %v716_v5  ;;  %v719_v18 = vadd.f32 %v693_v44, %v577_v14  ;;  %v721_v19 = vadd.f32 %v701_v45, %v630_v15 }
 0x17c   : > { %774 = vst [vmem:[%s1582_s8 + $0x20] sm:$0xff] %v990_v16  ;;  %775 = vst [vmem:[%s1582_s8 + $0x28] sm:$0xff] %v991_v17  ;;  %v992_v20 = vpack.c.bf16 %v719_v18, %v718_v12  ;;  %v993_v21 = vpack.c.bf16 %v721_v19, %v720_v13 }
 0x17e   : > { %776 = vst [vmem:[%s1582_s8 + $0x30] sm:$0xff] %v992_v20  ;;  %777 = vst [vmem:[%s1582_s8 + $0x38] sm:$0xff] %v993_v21 }
 0x17f   : > { %1233 = shalt.err (!%p1230_p7)
}
 0x180   : > { %s1234_s18 = scalar_lea.hbm %s1595_s23, 1024  ;;  %s1238_s6 = scalar_lea.hbm %s1650_s3, 3072 }
 0x181   : > { %p1235_p9 = scmp.ne.s32.totalorder %s1595_s23, %s1234_s18  ;;  %p1239_p10 = scmp.lt.u32.totalorder %s1595_s23, %s1650_s3 }
 0x182   : > { %p1240_p2 = scmp.lt.u32.totalorder %s1238_s6, %s1234_s18  ;;  %p1242_p3 = scmp.lt.u32.totalorder %s1234_s18, %s1595_s23 }
 0x183   : > { %p1236_p12 = pnand %p1235_p9, %p1675_p5 }
 0x184   : > { %p1241_p0 = por %p1240_p2, %p1239_p10 }
 0x185   : > { %p1237_p6 = pneg %p1236_p12 }
 0x186   : > { %p1243_p1 = por %p1242_p3, %p1241_p0 }
 0x188   : > { %p1244_p11 = pnand %p1243_p1, %p1237_p6 }
 0x18a   : > { %1247 = shalt.err (!%p1244_p11)
}
 0x18b   : > { %s1318_s30 = smov 256   ;;  %s1319_s7 = smov 768  }
 0x18c   : > { %s1320_s8 = smov 16  }
 0x18d   : > { %1003 = dma.vmem_to_hbm [thread:$0]  (%p1675_p5), %s1590_s25, 1024, %s1595_s23, %s779_s15, %s1318_s30, %s1319_s7, %s1320_s8  }
 0x18e PF: > { %p1023_p13 = scmp.ge.s32.totalorder %s1306_s17, 2  ;;  %s810_s27 = sand.u32 1, %s1286_s12  }
 0x18f   : > { %p1676_p8 = scmp.ne.s32.totalorder %s1665_s4, 0  ;;  %s811_s22 = scalar_lea.sflag [#allocation5], %s810_s27 }
 0x191   : > { %p1017_p4 = pnand %p1023_p13, %p1676_p8 }
 0x193   : > { %1281 = dma.done.wait (!%p1017_p4), %s811_s22, 1024  }
 0x194   : > { %1283 = vsyncadd (!%p1017_p4), %s811_s22, 4294966272  ;;  %s20_s17 = sadd.s32 1, %s1306_s17   ;;  %s1677_s28 = sld [smem:[#allocation13_spill]] }
 0x195   : > { %p17_p7 = scmp.ge.s32.totalorder %s20_s17, 5   ;;  %s1678_s12 = smov %s1290_s13 }
 0x196   : > { %s1679_s13 = smov %s1294_s14  ;;  %s1680_s14 = smov %s1388_s24 }
 0x197   : > { %s1681_s15 = smov %s1302_s16  ;;  %19 = sbr.rel (!%p17_p7) target bundleno = 9 (0x9), region = 102 }
 0x19a   : > { %s1682_s16 = smov %s1677_s28 }
 0x19e   :  { %816 = vsyncpa [#allocation4], 1 }
 0x19f   :  { %818 = vsyncpa [#allocation4 + $0x1], 1 }
 0x1a0   :  { %819 = vsyncpa [#allocation7], 1 }
 0x1a1   :  { %821 = vsyncpa [#allocation7 + $0x1], 1 }
 0x1a2   :  { %822 = vsyncpa [#allocation5], 1 }
 0x1a3   :  { %824 = vsyncpa [#allocation5 + $0x1], 1 }

</bundles_post_ra>
